<compile_context>
chip_gen: v5e
topology: v5e:2x2
jax: 0.10.0
libtpu: 0.0.40
codegen_flags: <defaults>
</compile_context>

<pallas_src>
import functools

import jax
import jax.numpy as jnp
from jax.experimental import pallas as pl
from jax.experimental.pallas import tpu as pltpu

_MIB = 1024 * 1024


def _round_up(x, m):
    return (x + m - 1) // m * m


def _vmem_capacity_bytes():
    """Best-effort physical VMEM per TensorCore (128 MiB v5e/v6e, 64 MiB v7x)."""
    try:
        cap = getattr(pltpu.get_tpu_info(), "vmem_capacity_bytes", None)
        if cap:
            return int(cap)
    except Exception:
        pass
    try:
        kind = jax.devices()[0].device_kind.lower()
    except Exception:
        kind = ""
    if "v5" in kind or "v6" in kind:
        return 128 * _MIB
    return 64 * _MIB  # conservative default (covers v7x / unknown parts)


def _num_tensorcores():
    """Best-effort TensorCores per chip (v7x = 2, v5e/v6e = 1)."""
    try:
        if "v7" in jax.devices()[0].device_kind.lower():
            return 2
    except Exception:
        pass
    return 1


def _largest_divisor_tile(dim, max_tile, multiple):
    """Largest divisor of `dim` that is a multiple of `multiple` and <= max_tile."""
    best = None
    t = multiple
    limit = min(dim, max(max_tile, multiple))
    while t <= limit:
        if dim % t == 0:
            best = t
        t += multiple
    return best


def _vmem_bytes(tm, th, in_ch, out_ch, compute_isz, out_isz):
    """Conservative working-set estimate: double-buffered in/out tiles + f32 acc."""
    return (2 * tm * in_ch * compute_isz        # x tiles
            + 2 * in_ch * th * compute_isz      # w1 tiles
            + 2 * th * 4                        # b1 tiles (f32)
            + 2 * th * out_ch * compute_isz     # w2 tiles
            + 2 * out_ch * 4                    # b2 (f32)
            + 2 * tm * out_ch * out_isz         # output tiles
            + tm * out_ch * 4)                  # f32 accumulator scratch


def _gelu_tanh(x):
    # tanh-approx GELU (same math in-kernel and in the reference).
    # TODO(synk): nn.GELU() default is erf-exact; erf has no Mosaic lowering, the
    # tanh approximation differs from it by < ~1e-3.
    c = 0.7978845608028654  # sqrt(2/pi)
    return 0.5 * x * (1.0 + jnp.tanh(c * (x + 0.044715 * x * x * x)))


def _mm_projector_kernel(x_ref, w1_ref, b1_ref, w2_ref, b2_ref, o_ref, acc_ref):
    """One (token-tile, hidden-tile) step of  linear_2(gelu(linear_1(x))).

    Grid: (tokens//tm, out_ch//th).  Axis 0 = token tile ("parallel"),
    axis 1 = hidden/out_channels contraction of linear_2 ("arbitrary").
    """
    k = pl.program_id(1)

    @pl.when(k == 0)
    def _init():
        # Fold the linear_2 bias into the accumulator init: the finalize step is
        # then a pure cast+store (no full-width f32 add on the last, non-overlapped
        # step of each token tile).
        acc_ref[...] = jnp.broadcast_to(b2_ref[...], acc_ref.shape)

    # linear_1 on an (in_ch, th) weight slice -> (tm, th) chunk of the hidden.
    h = jnp.dot(x_ref[...], w1_ref[...], preferred_element_type=jnp.float32)
    h = _gelu_tanh(h + b1_ref[...])

    # linear_2: accumulate this hidden chunk's contribution in f32.
    acc_ref[...] += jnp.dot(h.astype(w2_ref.dtype), w2_ref[...],
                            preferred_element_type=jnp.float32)

    @pl.when(k == pl.num_programs(1) - 1)
    def _finalize():
        o_ref[...] = acc_ref[...].astype(o_ref.dtype)


@functools.partial(jax.jit,
                   static_argnames=("tm", "th", "weights_resident", "compute_dtype"))
def mm_projector(x, w1, b1, w2, b2, *, tm=512, th=512,
                 weights_resident=None, compute_dtype=jnp.bfloat16):
    """MultiModalProjector:  linear_2(GELU(linear_1(x))), biases included.

    x : (..., in_ch)
    w1: (in_ch, out_ch)   = linear_1.weight.T      b1: (out_ch,)
    w2: (out_ch, out_ch)  = linear_2.weight.T      b2: (out_ch,)
    returns (..., out_ch) in x.dtype.  Matmuls run in `compute_dtype` (default
    bf16) with f32 MXU accumulation; biases are applied in f32.
    """
    orig_shape = x.shape
    in_ch = orig_shape[-1]
    out_ch = w1.shape[1]
    out_dtype = x.dtype

    cdt = jnp.dtype(compute_dtype)
    compute_isz = cdt.itemsize
    out_isz = jnp.dtype(out_dtype).itemsize
    # Packed-sublane minimum tile: f32 -> 8, bf16 -> 16, int8/fp8 -> 32.
    sub = max(8, 32 // compute_isz)

    x2d = x.reshape(-1, in_ch).astype(cdt)
    tokens = x2d.shape[0]

    # Pad out_ch up to a lane multiple so the hidden / output tiles stay 128-aligned
    # and the hidden tile is always a clean divisor (no full-width w2 fallback).
    out_ch_p = _round_up(out_ch, 128)
    if out_ch_p != out_ch:
        pad = out_ch_p - out_ch
        w1 = jnp.pad(w1, ((0, 0), (0, pad)))
        b1 = jnp.pad(b1, (0, pad))
        w2 = jnp.pad(w2, ((0, pad), (0, pad)))
        b2 = jnp.pad(b2, (0, pad))
    w1c = w1.astype(cdt)
    w2c = w2.astype(cdt)
    b1f = b1.astype(jnp.float32).reshape(1, out_ch_p)   # biases stay f32
    b2f = b2.astype(jnp.float32).reshape(1, out_ch_p)

    # Token tile: large (default 512, MXU/roofline-filling); shrunk for tiny inputs.
    tm_eff = _round_up(min(tm, _round_up(tokens, sub)), sub)

    vmem_cap = _vmem_capacity_bytes()
    vmem_budget = max(vmem_cap - 24 * _MIB, vmem_cap // 2)

    # Hidden tile: keep both weights fully VMEM-resident (single reduction step,
    # loaded once for the whole grid) when the working set fits the per-chip budget
    # (v5e/v6e 128 MiB); otherwise stream th-wide weight slices (v7x 64 MiB).
    if weights_resident is None:
        weights_resident = (
            _vmem_bytes(tm_eff, out_ch_p, in_ch, out_ch_p, compute_isz, out_isz)
            <= vmem_budget)
    if weights_resident:
        th_eff = out_ch_p
    else:
        th_eff = _largest_divisor_tile(out_ch_p, th, 128) or 128
        # Safety: shrink the token tile until the streamed working set fits.
        while (tm_eff > sub and
               _vmem_bytes(tm_eff, th_eff, in_ch, out_ch_p, compute_isz, out_isz)
               > vmem_budget):
            tm_eff = max(sub, _round_up(tm_eff // 2, sub))

    # Token padding; on 2-TensorCore parts (v7x) keep the tile count a multiple of
    # the core count so the "parallel" axis shards evenly across the megacore.
    padded = _round_up(tokens, tm_eff)
    n_tiles = padded // tm_eff
    n_cores = _num_tensorcores()
    if n_cores > 1 and n_tiles > 1 and n_tiles % n_cores:
        n_tiles = _round_up(n_tiles, n_cores)
        padded = n_tiles * tm_eff
    if padded != tokens:
        x2d = jnp.pad(x2d, ((0, padded - tokens), (0, 0)))

    grid = (n_tiles, out_ch_p // th_eff)

    out = pl.pallas_call(
        _mm_projector_kernel,
        out_shape=jax.ShapeDtypeStruct((padded, out_ch_p), out_dtype),
        grid_spec=pltpu.PrefetchScalarGridSpec(
            num_scalar_prefetch=0,
            grid=grid,
            in_specs=[
                pl.BlockSpec((tm_eff, in_ch), lambda i, k: (i, 0)),      # x tile
                pl.BlockSpec((in_ch, th_eff), lambda i, k: (0, k)),      # w1 slice
                pl.BlockSpec((1, th_eff), lambda i, k: (0, k)),          # b1 slice
                pl.BlockSpec((th_eff, out_ch_p), lambda i, k: (k, 0)),   # w2 slice
                pl.BlockSpec((1, out_ch_p), lambda i, k: (0, 0)),        # b2 (constant)
            ],
            out_specs=pl.BlockSpec((tm_eff, out_ch_p), lambda i, k: (i, 0)),
            scratch_shapes=[pltpu.VMEM((tm_eff, out_ch_p), jnp.float32)],
        ),
        compiler_params=pltpu.CompilerParams(
            dimension_semantics=("parallel", "arbitrary"),
            vmem_limit_bytes=int(vmem_budget),
        ),
    )(x2d, w1c, b1f, w2c, b2f)

    return out[:tokens, :out_ch].reshape(orig_shape[:-1] + (out_ch,))


def concate_fusion_decoder_input(tokens, post_tokens, image_features,
                                 tok_embedding_table, w1, b1, w2, b2,
                                 **proj_kwargs):
    """ConcateFusion._get_decoder_input:
       concat(tok_embeddings(tokens), mm_projector(image_features),
              tok_embeddings(post_tokens)) along the sequence dim."""
    # TODO(synk): the embedding lookup is a data-dependent row gather; done with
    # jnp.take at the XLA level (a scalar-prefetch Pallas gather adds no fusion win).
    pre_img_embed = jnp.take(tok_embedding_table, tokens, axis=0)
    if image_features is None:
        assert post_tokens is None
        return pre_img_embed
    image_embeds = mm_projector(image_features, w1, b1, w2, b2, **proj_kwargs)
    image_embeds = image_embeds.astype(pre_img_embed.dtype)
    if post_tokens is None:
        return jnp.concatenate([pre_img_embed, image_embeds], axis=1)
    post_img_embed = jnp.take(tok_embedding_table, post_tokens, axis=0)
    return jnp.concatenate([pre_img_embed, image_embeds, post_img_embed], axis=1)


if __name__ == "__main__":
    # Small config consistent with ConcateFusion (scaled down from 1024 -> 4096):
    #   mm_proj_in_channels=64, mm_proj_out_channels=embed_dim=256, vocab=128.
    vocab, in_ch, out_ch = 128, 64, 256
    batch, pre_len, img_len, post_len = 1, 8, 16, 4

    key = jax.random.PRNGKey(0)
    k_emb, k_img, kw1, kb1, kw2, kb2, kt1, kt2 = jax.random.split(key, 8)

    emb = jax.random.normal(k_emb, (vocab, out_ch), dtype=jnp.float32) * 0.02
    image_features = jax.random.normal(k_img, (batch, img_len, in_ch), dtype=jnp.float32)
    w1 = jax.random.normal(kw1, (in_ch, out_ch), dtype=jnp.float32) * 0.05   # linear_1.weight.T
    b1 = jax.random.normal(kb1, (out_ch,), dtype=jnp.float32) * 0.05
    w2 = jax.random.normal(kw2, (out_ch, out_ch), dtype=jnp.float32) * 0.05  # linear_2.weight.T
    b2 = jax.random.normal(kb2, (out_ch,), dtype=jnp.float32) * 0.05
    tokens = jax.random.randint(kt1, (batch, pre_len), 0, vocab)
    post_tokens = jax.random.randint(kt2, (batch, post_len), 0, vocab)

    # Pure-JAX reference of the same forward semantics.
    def ref_proj(x):
        return _gelu_tanh(x @ w1 + b1) @ w2 + b2

    ref = jnp.concatenate([jnp.take(emb, tokens, axis=0),
                           ref_proj(image_features),
                           jnp.take(emb, post_tokens, axis=0)], axis=1)

    # 1) Default fusion path: auto weight residency, bf16 compute, f32 accumulation.
    out = concate_fusion_decoder_input(tokens, post_tokens, image_features,
                                       emb, w1, b1, w2, b2)
    jax.block_until_ready(out)
    assert out.shape == (batch, pre_len + img_len + post_len, out_ch)
    assert jnp.allclose(out, ref, atol=3e-2, rtol=3e-2)

    # 2) Streamed-weight path (v7x-style): forces the multi-step hidden reduction
    #    (2 k-steps at out_ch=256 with th=128).
    out_stream = mm_projector(image_features, w1, b1, w2, b2,
                              th=128, weights_resident=False)
    jax.block_until_ready(out_stream)
    assert jnp.allclose(out_stream, ref_proj(image_features), atol=3e-2, rtol=3e-2)

    # 3) f32 compute path (tighter numerical check; MXU default precision).
    out_f32 = mm_projector(image_features, w1, b1, w2, b2,
                           compute_dtype=jnp.float32)
    jax.block_until_ready(out_f32)
    assert jnp.allclose(out_f32, ref_proj(image_features), atol=5e-3, rtol=5e-3)

    # 4) bf16 weights/activations end to end (production configuration).
    out_bf16 = mm_projector(image_features.astype(jnp.bfloat16),
                            w1.astype(jnp.bfloat16), b1.astype(jnp.bfloat16),
                            w2.astype(jnp.bfloat16), b2.astype(jnp.bfloat16))
    jax.block_until_ready(out_bf16)
    assert jnp.allclose(out_bf16.astype(jnp.float32), ref_proj(image_features),
                        atol=0.1, rtol=0.1)

    print("KERNEL_OK")
</pallas_src>

<mosaic_0001>
module attributes {stable_mosaic.version = 11 : i64} {
  func.func @_mm_projector_kernel(%arg0: i32, %arg1: i32, %arg2: memref<16x64xbf16, #tpu.memory_space<vmem>>, %arg3: memref<64x256xbf16, #tpu.memory_space<vmem>>, %arg4: memref<1x256xf32, #tpu.memory_space<vmem>>, %arg5: memref<256x256xbf16, #tpu.memory_space<vmem>>, %arg6: memref<1x256xf32, #tpu.memory_space<vmem>>, %arg7: memref<16x256xf32, #tpu.memory_space<vmem>>, %arg8: memref<16x256xf32, #tpu.memory_space<vmem>>) attributes {dimension_semantics = [#tpu.dimension_semantics<parallel>, #tpu.dimension_semantics<arbitrary>], iteration_bounds = array<i64: 1, 1>, scalar_prefetch = 0 : i64, scratch_operands = 1 : i64, tpu.core_type = #tpu.core_type<tc>, window_params = [{transform_indices = @transform_0, window_bounds = array<i64: 16, 64>}, {transform_indices = @transform_1, window_bounds = array<i64: 64, 256>}, {transform_indices = @transform_2, window_bounds = array<i64: 1, 256>}, {transform_indices = @transform_3, window_bounds = array<i64: 256, 256>}, {pipeline_mode = #tpu.pipeline_mode<synchronous>, transform_indices = @transform_4, window_bounds = array<i64: 1, 256>}, {transform_indices = @transform_5, window_bounds = array<i64: 16, 256>}]} {
    %c0_i32 = arith.constant 0 : i32
    %0 = arith.cmpi eq, %arg1, %c0_i32 : i32
    %1 = arith.extui %0 : i1 to i32
    %c0_i32_0 = arith.constant 0 : i32
    %2 = arith.cmpi ne, %1, %c0_i32_0 : i32
    scf.if %2 {
      %c0_19 = arith.constant 0 : index
      %c0_20 = arith.constant 0 : index
      %31 = vector.load %arg6[%c0_19, %c0_20] : memref<1x256xf32, #tpu.memory_space<vmem>>, vector<1x256xf32>
      %32 = vector.shape_cast %31 : vector<1x256xf32> to vector<1x256xf32>
      %33 = vector.broadcast %32 : vector<1x256xf32> to vector<16x256xf32>
      %c0_21 = arith.constant 0 : index
      %c0_22 = arith.constant 0 : index
      %34 = vector.load %arg8[%c0_21, %c0_22] : memref<16x256xf32, #tpu.memory_space<vmem>>, vector<16x256xf32>
      tpu.vector_store %arg8[%c0_21, %c0_22], %33 {strides = array<i32>} : memref<16x256xf32, #tpu.memory_space<vmem>>, vector<16x256xf32>,
    } else {
    }
    %c0 = arith.constant 0 : index
    %c0_1 = arith.constant 0 : index
    %3 = vector.load %arg2[%c0, %c0_1] : memref<16x64xbf16, #tpu.memory_space<vmem>>, vector<16x64xbf16>
    %c0_2 = arith.constant 0 : index
    %c0_3 = arith.constant 0 : index
    %4 = vector.load %arg3[%c0_2, %c0_3] : memref<64x256xbf16, #tpu.memory_space<vmem>>, vector<64x256xbf16>
    %cst = arith.constant dense<0.000000e+00> : vector<16x256xf32>
    %5 = tpu.matmul %3, %4, %cst {dimension_numbers = #tpu.dot_dimension_numbers<[1], [0], [0], [1], [0, 0, 1, 1], [], []>} : vector<16x64xbf16>, vector<64x256xbf16>, vector<16x256xf32> -> vector<16x256xf32>
    %c0_4 = arith.constant 0 : index
    %c0_5 = arith.constant 0 : index
    %6 = vector.load %arg4[%c0_4, %c0_5] : memref<1x256xf32, #tpu.memory_space<vmem>>, vector<1x256xf32>
    %7 = vector.broadcast %6 : vector<1x256xf32> to vector<16x256xf32>
    %8 = arith.addf %5, %7 : vector<16x256xf32>
    %cst_6 = arith.constant 5.000000e-01 : f32
    %9 = vector.broadcast %cst_6 : f32 to vector<16x256xf32>
    %10 = arith.mulf %9, %8 : vector<16x256xf32>
    %cst_7 = arith.constant 4.471500e-02 : f32
    %11 = vector.broadcast %cst_7 : f32 to vector<16x256xf32>
    %12 = arith.mulf %11, %8 : vector<16x256xf32>
    %13 = arith.mulf %12, %8 : vector<16x256xf32>
    %14 = arith.mulf %13, %8 : vector<16x256xf32>
    %15 = arith.addf %8, %14 : vector<16x256xf32>
    %cst_8 = arith.constant 0.797884583 : f32
    %16 = vector.broadcast %cst_8 : f32 to vector<16x256xf32>
    %17 = arith.mulf %16, %15 : vector<16x256xf32>
    %18 = math.tanh %17 : vector<16x256xf32>
    %cst_9 = arith.constant 1.000000e+00 : f32
    %19 = vector.broadcast %cst_9 : f32 to vector<16x256xf32>
    %20 = arith.addf %19, %18 : vector<16x256xf32>
    %21 = arith.mulf %10, %20 : vector<16x256xf32>
    %c0_10 = arith.constant 0 : index
    %c0_11 = arith.constant 0 : index
    %22 = vector.load %arg8[%c0_10, %c0_11] : memref<16x256xf32, #tpu.memory_space<vmem>>, vector<16x256xf32>
    %23 = arith.truncf %21 : vector<16x256xf32> to vector<16x256xbf16>
    %c0_12 = arith.constant 0 : index
    %c0_13 = arith.constant 0 : index
    %24 = vector.load %arg5[%c0_12, %c0_13] : memref<256x256xbf16, #tpu.memory_space<vmem>>, vector<256x256xbf16>
    %cst_14 = arith.constant dense<0.000000e+00> : vector<16x256xf32>
    %25 = tpu.matmul %23, %24, %cst_14 {dimension_numbers = #tpu.dot_dimension_numbers<[1], [0], [0], [1], [0, 0, 1, 1], [], []>} : vector<16x256xbf16>, vector<256x256xbf16>, vector<16x256xf32> -> vector<16x256xf32>
    %26 = arith.addf %22, %25 : vector<16x256xf32>
    %c0_15 = arith.constant 0 : index
    %c0_16 = arith.constant 0 : index
    %27 = vector.load %arg8[%c0_15, %c0_16] : memref<16x256xf32, #tpu.memory_space<vmem>>, vector<16x256xf32>
    tpu.vector_store %arg8[%c0_15, %c0_16], %26 {strides = array<i32>} : memref<16x256xf32, #tpu.memory_space<vmem>>, vector<16x256xf32>,
    %c0_i32_17 = arith.constant 0 : i32
    %28 = arith.cmpi eq, %arg1, %c0_i32_17 : i32
    %29 = arith.extui %28 : i1 to i32
    %c0_i32_18 = arith.constant 0 : i32
    %30 = arith.cmpi ne, %29, %c0_i32_18 : i32
    scf.if %30 {
      %c0_19 = arith.constant 0 : index
      %c0_20 = arith.constant 0 : index
      %31 = vector.load %arg8[%c0_19, %c0_20] : memref<16x256xf32, #tpu.memory_space<vmem>>, vector<16x256xf32>
      %c0_21 = arith.constant 0 : index
      %c0_22 = arith.constant 0 : index
      %32 = vector.load %arg7[%c0_21, %c0_22] : memref<16x256xf32, #tpu.memory_space<vmem>>, vector<16x256xf32>
      tpu.vector_store %arg7[%c0_21, %c0_22], %31 {strides = array<i32>} : memref<16x256xf32, #tpu.memory_space<vmem>>, vector<16x256xf32>,
    } else {
    }
    return
  }
  func.func @transform_0(%arg0: i32, %arg1: i32) -> (i32, i32) {
    %c0_i32 = arith.constant 0 : i32
    %c0_i32_0 = arith.constant 0 : i32
    return %arg0, %c0_i32 : i32, i32
  }
  func.func @transform_1(%arg0: i32, %arg1: i32) -> (i32, i32) {
    %c0_i32 = arith.constant 0 : i32
    %c0_i32_0 = arith.constant 0 : i32
    return %c0_i32, %arg1 : i32, i32
  }
  func.func @transform_2(%arg0: i32, %arg1: i32) -> (i32, i32) {
    %c0_i32 = arith.constant 0 : i32
    %c0_i32_0 = arith.constant 0 : i32
    return %c0_i32, %arg1 : i32, i32
  }
  func.func @transform_3(%arg0: i32, %arg1: i32) -> (i32, i32) {
    %c0_i32 = arith.constant 0 : i32
    %c0_i32_0 = arith.constant 0 : i32
    return %arg1, %c0_i32 : i32, i32
  }
  func.func @transform_4(%arg0: i32, %arg1: i32) -> (i32, i32) {
    %c0_i32 = arith.constant 0 : i32
    %c0_i32_0 = arith.constant 0 : i32
    %c0_i32_1 = arith.constant 0 : i32
    return %c0_i32, %c0_i32_0 : i32, i32
  }
  func.func @transform_5(%arg0: i32, %arg1: i32) -> (i32, i32) {
    %c0_i32 = arith.constant 0 : i32
    %c0_i32_0 = arith.constant 0 : i32
    return %arg0, %c0_i32 : i32, i32
  }
}

</mosaic_0001>

<bundles_post_ra>
// kernel: mm_projector.1
= control target key start
LH: loop header
LB: loop body
LE: loop exit
PB: predicated region body
PF: predicated region fallthrough
CT: control target
= control target key end

     0   :  { %s985_s0 = inlined_call_operand.vmem [shape: bf16[16,64], index: 0, kind: input, shape index: {}]   ;;  %s986_s1 = inlined_call_operand.vmem [shape: bf16[64,256], index: 1, kind: input, shape index: {}]   ;;  %s987_s2 = inlined_call_operand.vmem [shape: f32[1,256], index: 2, kind: input, shape index: {}]   ;;  %s988_s3 = inlined_call_operand.vmem [shape: bf16[256,256], index: 3, kind: input, shape index: {}]   ;;  %s989_s4 = inlined_call_operand.vmem [shape: f32[1,256], index: 4, kind: input, shape index: {}]   ;;  %s990_s5 = inlined_call_operand.hbm [shape: f32[16,256], index: 5, kind: output, shape index: {}]  }
   0x1   :  { %v486_v0 = vld [vmem:[%s986_s1 + $0x30] sm:$0xf]  ;;  %v630_v1 = vld [vmem:[%s986_s1 + $0x34] sm:$0xf0]  ;;  %v629_v2 = vld [vmem:[%s986_s1 + $0x34] sm:$0xf] }
   0x2   :  { %v487_v3 = vor.u32 %v630_v1, %v486_v0  ;;  %v488_v4 = vld [vmem:[%s986_s1 + $0x38] sm:$0xf0]  ;;  %v478_v5 = vld [vmem:[%s986_s1 + $0x20] sm:$0xf]  ;;  %v628_v6 = vld [vmem:[%s986_s1 + $0x24] sm:$0xf0] }
   0x3   :  { %v491_v7 = vor.u32 %v629_v2, %v488_v4  ;;  %v627_v8 = vld [vmem:[%s986_s1 + $0x24] sm:$0xf]  ;;  %v480_v9 = vld [vmem:[%s986_s1 + $0x28] sm:$0xf0]  ;;  %v479_v10 = vor.u32 %v628_v6, %v478_v5  ;;  %v470_v12 = vld [vmem:[%s986_s1 + $0x10] sm:$0xf] }
   0x4   :  { %105 = vmatpush.bf16.msra.mxu0 %v487_v3  ;;  %v483_v11 = vor.u32 %v627_v8, %v480_v9  ;;  %v626_v13 = vld [vmem:[%s986_s1 + $0x14] sm:$0xf0]  ;;  %v625_v14 = vld [vmem:[%s986_s1 + $0x14] sm:$0xf]  ;;  %v472_v15 = vld [vmem:[%s986_s1 + $0x18] sm:$0xf0] }
   0x5   :  { %119 = vmatpush.bf16.msra.mxu1 %v491_v7 }
   0x6   :  { %10 = vsyncpa [#allocation4], 0  ;;  %v471_v16 = vor.u32 %v626_v13, %v470_v12  ;;  %v475_v17 = vor.u32 %v625_v14, %v472_v15  ;;  %v462_v18 = vld [vmem:[%s986_s1] sm:$0xf]  ;;  %v624_v19 = vld [vmem:[%s986_s1 + $0x4] sm:$0xf0] }
   0x7   :  { %v623_v20 = vld [vmem:[%s986_s1 + $0x4] sm:$0xf]  ;;  %v464_v21 = vld [vmem:[%s986_s1 + $0x8] sm:$0xf0]  ;;  %v463_v22 = vor.u32 %v624_v19, %v462_v18  ;;  %vm97_vm0 = vcmask 523264   ;;  %s700_s22 = smov [#allocation3]  }
   0x8   :  { %106 = vmatpush.bf16.msra.mxu0 %v479_v10  ;;  %v467_v23 = vor.u32 %v623_v20, %v464_v21  ;;  %v622_v24 = vld [vmem:[%s985_s0] sm:$0xff]  ;;  %v552_v25 = vld [vmem:[%s988_s3 + $0x70] sm:$0xf]  ;;  %v646_v26 = vld [vmem:[%s988_s3 + $0x74] sm:$0xf0]  ;;  %s444_s25 = sshll.u32 %s990_s5, 4  ;;  %s445_s25 = int_to_ptr.hbm [resolvable:$true] %s444_s25 }
   0x9   :  { %120 = vmatpush.bf16.msra.mxu1 %v483_v11  ;;  %v616_v27 = vld [vmem:[%s988_s3 + $0xf0] sm:$0xf]  ;;  %v553_v28 = vor.u32 %v646_v26, %v552_v25  ;;  %v662_v29 = vld [vmem:[%s988_s3 + $0xf4] sm:$0xf0]  ;;  %v645_v30 = vld [vmem:[%s988_s3 + $0x74] sm:$0xf] }
   0xa   :  { %v554_v31 = vld [vmem:[%s988_s3 + $0x78] sm:$0xf0]  ;;  %v617_v32 = vor.u32 %v662_v29, %v616_v27  ;;  %v661_v34 = vld [vmem:[%s988_s3 + $0xf4] sm:$0xf]  ;;  %v544_v37 = vld [vmem:[%s988_s3 + $0x60] sm:$0xf] }
   0xb   :  { %v557_v33 = vor.u32 %v645_v30, %v554_v31  ;;  %v618_v35 = vld [vmem:[%s988_s3 + $0xf8] sm:$0xf0]  ;;  %363 = vmatpush.bf16.msra.mxu2 %v553_v28  ;;  %v644_v38 = vld [vmem:[%s988_s3 + $0x64] sm:$0xf0]  ;;  %v608_v39 = vld [vmem:[%s988_s3 + $0xe0] sm:$0xf] }
   0xc   :  { %107 = vmatpush.bf16.msra.mxu0 %v471_v16  ;;  %v621_v36 = vor.u32 %v661_v34, %v618_v35  ;;  %377 = vmatpush.bf16.msra.mxu3 %v617_v32  ;;  %v545_v40 = vor.u32 %v644_v38, %v544_v37  ;;  %v660_v41 = vld [vmem:[%s988_s3 + $0xe4] sm:$0xf0]  ;;  %v643_v42 = vld [vmem:[%s988_s3 + $0x64] sm:$0xf]  ;;  %v546_v43 = vld [vmem:[%s988_s3 + $0x68] sm:$0xf0] }
   0xd   :  { %121 = vmatpush.bf16.msra.mxu1 %v475_v17  ;;  %v609_v44 = vor.u32 %v660_v41, %v608_v39  ;;  %v549_v45 = vor.u32 %v643_v42, %v546_v43  ;;  %v659_v46 = vld [vmem:[%s988_s3 + $0xe4] sm:$0xf]  ;;  %v610_v47 = vld [vmem:[%s988_s3 + $0xe8] sm:$0xf0]  ;;  %v536_v49 = vld [vmem:[%s988_s3 + $0x50] sm:$0xf] }
   0xe   :  { %v613_v48 = vor.u32 %v659_v46, %v610_v47  ;;  %v642_v50 = vld [vmem:[%s988_s3 + $0x54] sm:$0xf0]  ;;  %v600_v51 = vld [vmem:[%s988_s3 + $0xd0] sm:$0xf]  ;;  %v641_v54 = vld [vmem:[%s988_s3 + $0x54] sm:$0xf] }
   0xf   :  { %364 = vmatpush.bf16.msra.mxu2 %v545_v40  ;;  %v537_v52 = vor.u32 %v642_v50, %v536_v49  ;;  %v658_v53 = vld [vmem:[%s988_s3 + $0xd4] sm:$0xf0]  ;;  %v538_v55 = vld [vmem:[%s988_s3 + $0x58] sm:$0xf0]  ;;  %v657_v58 = vld [vmem:[%s988_s3 + $0xd4] sm:$0xf] }
  0x10   :  { %108 = vmatpush.bf16.msra.mxu0 %v463_v22  ;;  %378 = vmatpush.bf16.msra.mxu3 %v609_v44  ;;  %v601_v56 = vor.u32 %v658_v53, %v600_v51  ;;  %v541_v57 = vor.u32 %v641_v54, %v538_v55  ;;  %v602_v59 = vld [vmem:[%s988_s3 + $0xd8] sm:$0xf0]  ;;  %v528_v61 = vld [vmem:[%s988_s3 + $0x40] sm:$0xf]  ;;  %v640_v62 = vld [vmem:[%s988_s3 + $0x44] sm:$0xf0] }
  0x11   :  { %122 = vmatpush.bf16.msra.mxu1 %v467_v23  ;;  %v605_v60 = vor.u32 %v657_v58, %v602_v59  ;;  %v592_v63 = vld [vmem:[%s988_s3 + $0xc0] sm:$0xf]  ;;  %v529_v0 = vor.u32 %v640_v62, %v528_v61  ;;  %v656_v1 = vld [vmem:[%s988_s3 + $0xc4] sm:$0xf0]  ;;  %v639_v2 = vld [vmem:[%s988_s3 + $0x44] sm:$0xf] }
  0x12   :  { %v530_v3 = vld [vmem:[%s988_s3 + $0x48] sm:$0xf0]  ;;  %v593_v4 = vor.u32 %v656_v1, %v592_v63  ;;  %v655_v6 = vld [vmem:[%s988_s3 + $0xc4] sm:$0xf]  ;;  %v520_v8 = vld [vmem:[%s988_s3 + $0x30] sm:$0xf] }
  0x13   :  { %492 = vmatmul.msk.bf16.vlgmr.msra.gmra.mxu0 %vm97_vm0, %v622_v24  ;;  %365 = vmatpush.bf16.msra.mxu2 %v537_v52  ;;  %v533_v5 = vor.u32 %v639_v2, %v530_v3  ;;  %v594_v7 = vld [vmem:[%s988_s3 + $0xc8] sm:$0xf0]  ;;  %v638_v10 = vld [vmem:[%s988_s3 + $0x34] sm:$0xf0]  ;;  %v584_v11 = vld [vmem:[%s988_s3 + $0xb0] sm:$0xf] }
  0x14   :  { %493 = vmatmul.msk.bf16.vlgmr.msra.gmra.mxu1 %vm97_vm0, %v622_v24  ;;  %391 = vmatpush.bf16.msrb.mxu0 %v557_v33  ;;  %v597_v9 = vor.u32 %v655_v6, %v594_v7  ;;  %v654_v12 = vld [vmem:[%s988_s3 + $0xb4] sm:$0xf0]  ;;  %v521_v13 = vor.u32 %v638_v10, %v520_v8  ;;  %v637_v14 = vld [vmem:[%s988_s3 + $0x34] sm:$0xf]  ;;  %v522_v15 = vld [vmem:[%s988_s3 + $0x38] sm:$0xf0] }
  0x15   :  { %405 = vmatpush.bf16.msrb.mxu1 %v621_v36  ;;  %379 = vmatpush.bf16.msra.mxu3 %v601_v56  ;;  %v653_v16 = vld [vmem:[%s988_s3 + $0xb4] sm:$0xf]  ;;  %v585_v17 = vor.u32 %v654_v12, %v584_v11  ;;  %v525_v18 = vor.u32 %v637_v14, %v522_v15  ;;  %v586_v19 = vld [vmem:[%s988_s3 + $0xb8] sm:$0xf0]  ;;  %v512_v20 = vld [vmem:[%s988_s3 + $0x20] sm:$0xf] }
  0x16   :  { %v636_v21 = vld [vmem:[%s988_s3 + $0x24] sm:$0xf0]  ;;  %v589_v22 = vor.u32 %v653_v16, %v586_v19  ;;  %v576_v23 = vld [vmem:[%s988_s3 + $0xa0] sm:$0xf]  ;;  %v635_v25 = vld [vmem:[%s988_s3 + $0x24] sm:$0xf] }
  0x17   :  { %366 = vmatpush.bf16.msra.mxu2 %v529_v0  ;;  %v652_v24 = vld [vmem:[%s988_s3 + $0xa4] sm:$0xf0]  ;;  %v514_v26 = vld [vmem:[%s988_s3 + $0x28] sm:$0xf0]  ;;  %v651_v27 = vld [vmem:[%s988_s3 + $0xa4] sm:$0xf]  ;;  %v513_v29 = vor.u32 %v636_v21, %v512_v20 }
  0x18   :  { %392 = vmatpush.bf16.msrb.mxu0 %v549_v45  ;;  %v578_v28 = vld [vmem:[%s988_s3 + $0xa8] sm:$0xf0]  ;;  %v577_v30 = vor.u32 %v652_v24, %v576_v23  ;;  %v517_v31 = vor.u32 %v635_v25, %v514_v26  ;;  %v504_v32 = vld [vmem:[%s988_s3 + $0x10] sm:$0xf]  ;;  %v634_v33 = vld [vmem:[%s988_s3 + $0x14] sm:$0xf0] }
  0x19   :  { %406 = vmatpush.bf16.msrb.mxu1 %v613_v48  ;;  %380 = vmatpush.bf16.msra.mxu3 %v593_v4  ;;  %v568_v34 = vld [vmem:[%s988_s3 + $0x90] sm:$0xf]  ;;  %v581_v35 = vor.u32 %v651_v27, %v578_v28  ;;  %v650_v36 = vld [vmem:[%s988_s3 + $0x94] sm:$0xf0]  ;;  %v633_v37 = vld [vmem:[%s988_s3 + $0x14] sm:$0xf]  ;;  %v505_v42 = vor.u32 %v634_v33, %v504_v32 }
  0x1a   :  { %v506_v38 = vld [vmem:[%s988_s3 + $0x18] sm:$0xf0]  ;;  %v649_v39 = vld [vmem:[%s988_s3 + $0x94] sm:$0xf]  ;;  %v46_v41 = vld [vmem:[%s987_s2] sm:$0x3]  ;;  %v569_v43 = vor.u32 %v650_v36, %v568_v34 }
  0x1b   :  { %367 = vmatpush.bf16.msra.mxu2 %v521_v13  ;;  %v570_v40 = vld [vmem:[%s988_s3 + $0x98] sm:$0xf0]  ;;  %v509_v44 = vor.u32 %v633_v37, %v506_v38  ;;  %v496_v45 = vld [vmem:[%s988_s3] sm:$0xf]  ;;  %v632_v46 = vld [vmem:[%s988_s3 + $0x4] sm:$0xf0] }
  0x1c   :  { %393 = vmatpush.bf16.msrb.mxu0 %v541_v57  ;;  %v560_v47 = vld [vmem:[%s988_s3 + $0x80] sm:$0xf]  ;;  %v573_v48 = vor.u32 %v649_v39, %v570_v40  ;;  %v648_v49 = vld [vmem:[%s988_s3 + $0x84] sm:$0xf0]  ;;  %v631_v50 = vld [vmem:[%s988_s3 + $0x4] sm:$0xf]  ;;  %v497_v54 = vor.u32 %v632_v46, %v496_v45 }
  0x1d   :  { %407 = vmatpush.bf16.msrb.mxu1 %v605_v60  ;;  %381 = vmatpush.bf16.msra.mxu3 %v585_v17  ;;  %v498_v51 = vld [vmem:[%s988_s3 + $0x8] sm:$0xf0]  ;;  %v647_v52 = vld [vmem:[%s988_s3 + $0x84] sm:$0xf]  ;;  %v48_v55 = vperm.slane %v46_v41, 0  ;;  %v561_v56 = vor.u32 %v648_v49, %v560_v47  ;;  %v49_v58 = vperm.slane %v46_v41, 1 }
  0x1e   :  { %v562_v53 = vld [vmem:[%s988_s3 + $0x88] sm:$0xf0]  ;;  %v501_v57 = vor.u32 %v631_v50, %v498_v51  ;;  %s701_s26 = smov 256   ;;  %s702_s27 = smov 16  }
  0x1f   :  { %368 = vmatpush.bf16.msra.mxu2 %v513_v29  ;;  %v565_v59 = vor.u32 %v647_v52, %v562_v53 }
  0x20   :  { %394 = vmatpush.bf16.msrb.mxu0 %v533_v5 }
  0x21   :  { %408 = vmatpush.bf16.msrb.mxu1 %v597_v9  ;;  %382 = vmatpush.bf16.msra.mxu3 %v577_v30 }
  0x23   :  { %369 = vmatpush.bf16.msra.mxu2 %v505_v42  ;;  %v26_v42 = vld [vmem:[%s989_s4] sm:$0x3]  ;;  %s442_s4 = sshll.u32 %s700_s22, 4  ;;  %s443_s4 = int_to_ptr.vmem [resolvable:$true] %s442_s4 }
  0x24   :  { %395 = vmatpush.bf16.msrb.mxu0 %v525_v18  ;;  %v28_v49 = vperm.slane %v26_v42, 0 }
  0x25   :  { %409 = vmatpush.bf16.msrb.mxu1 %v589_v22  ;;  %383 = vmatpush.bf16.msra.mxu3 %v569_v43 }
  0x27   :  { %370 = vmatpush.bf16.msra.mxu2 %v497_v54 }
  0x28   :  { %396 = vmatpush.bf16.msrb.mxu0 %v517_v31 }
  0x29   :  { %410 = vmatpush.bf16.msrb.mxu1 %v581_v35  ;;  %384 = vmatpush.bf16.msra.mxu3 %v561_v56 }
  0x2c   :  { %397 = vmatpush.bf16.msrb.mxu0 %v509_v44  ;;  %v29_v44 = vperm.slane %v26_v42, 1 }
  0x2d   :  { %411 = vmatpush.bf16.msrb.mxu1 %v573_v48 }
  0x30   :  { %398 = vmatpush.bf16.msrb.mxu0 %v501_v57 }
  0x31   :  { %412 = vmatpush.bf16.msrb.mxu1 %v565_v59 }
  0x90   :  { %v110_v60 = vpop.f32.mrf.mxu0 }
  0x91   :  { %v111_v61 = vadd.f32 %v110_v60, %v48_v55  ;;  %v124_v62 = vpop.f32.mrf.mxu1 }
  0x92   :  { %v125_v63 = vadd.f32 %v124_v62, %v49_v58 }
  0x93   :  { %v133_v0 = vmul.f32 0.044715, %v111_v61  ;;  %v129_v30 = vmul.f32 0.5, %v111_v61 }
  0x94   :  { %v134_v1 = vmul.f32 0.044715, %v125_v63  ;;  %v130_v33 = vmul.f32 0.5, %v125_v63 }
  0x95   :  { %v137_v2 = vmul.f32 %v133_v0, %v111_v61 }
  0x96   :  { %v138_v3 = vmul.f32 %v134_v1, %v125_v63 }
  0x97   :  { %v141_v4 = vmul.f32 %v137_v2, %v111_v61 }
  0x98   :  { %v112_v5 = vpop.f32.mrf.mxu0  ;;  %v142_v6 = vmul.f32 %v138_v3, %v125_v63 }
  0x99   :  { %v113_v7 = vadd.f32 %v112_v5, %v48_v55  ;;  %v126_v8 = vpop.f32.mrf.mxu1  ;;  %v145_v9 = vadd.f32 %v141_v4, %v111_v61 }
  0x9a   :  { %v127_v10 = vadd.f32 %v126_v8, %v49_v58  ;;  %v146_v11 = vadd.f32 %v142_v6, %v125_v63 }
  0x9b   :  { %v135_v12 = vmul.f32 0.044715, %v113_v7  ;;  %v149_v15 = vmul.f32 0.7978846, %v145_v9  ;;  %v131_v31 = vmul.f32 0.5, %v113_v7 }
  0x9c   :  { %v136_v13 = vmul.f32 0.044715, %v127_v10  ;;  %v150_v17 = vmul.f32 0.7978846, %v146_v11  ;;  %v132_v34 = vmul.f32 0.5, %v127_v10 }
  0x9d   :  { %v139_v14 = vmul.f32 %v135_v12, %v113_v7  ;;  %666 = vtanh.f32 %v149_v15 }
  0x9e   :  { %v140_v16 = vmul.f32 %v136_v13, %v127_v10  ;;  %668 = vtanh.f32 %v150_v17 }
  0x9f   :  { %v143_v18 = vmul.f32 %v139_v14, %v113_v7 }
  0xa0   :  { %v144_v19 = vmul.f32 %v140_v16, %v127_v10 }
  0xa1   :  { %v147_v20 = vadd.f32 %v143_v18, %v113_v7 }
  0xa2   :  { %v148_v21 = vadd.f32 %v144_v19, %v127_v10 }
  0xa3   :  { %v151_v22 = vmul.f32 0.7978846, %v147_v20  ;;  %v667_v24 = vpop.eup %666 }
  0xa4   :  { %v152_v23 = vmul.f32 0.7978846, %v148_v21  ;;  %v669_v25 = vpop.eup %668  ;;  %v157_v26 = vadd.f32 1.0, %v667_v24 }
  0xa5   :  { %670 = vtanh.f32 %v151_v22  ;;  %v158_v28 = vadd.f32 1.0, %v669_v25 }
  0xa6   :  { %672 = vtanh.f32 %v152_v23  ;;  %v161_v36 = vmul.f32 %v157_v26, %v129_v30 }
  0xa7   :  { %v162_v38 = vmul.f32 %v158_v28, %v130_v33 }
  0xab   :  { %v671_v27 = vpop.eup %670 }
  0xac   :  { %v673_v29 = vpop.eup %672  ;;  %v159_v32 = vadd.f32 1.0, %v671_v27 }
  0xad   :  { %v160_v35 = vadd.f32 1.0, %v673_v29 }
  0xae   :  { %v163_v37 = vmul.f32 %v159_v32, %v131_v31 }
  0xaf   :  { %v164_v39 = vmul.f32 %v160_v35, %v132_v34 }
  0xb0   :  { %v169_v40 = vpack.c.bf16 %v163_v37, %v161_v36 }
  0xb1   :  { %v170_v41 = vpack.c.bf16 %v164_v39, %v162_v38 }
  0xb2   :  { %371 = vmatmul.bf16.vlgmr.msra.gmra.mxu2 %v169_v40  ;;  %399 = vmatmul.bf16.vlgmr.msrb.gmra.mxu0 %v169_v40 }
  0xb3   :  { %385 = vmatmul.bf16.vlgmr.msra.gmra.mxu3 %v170_v41  ;;  %413 = vmatmul.bf16.vlgmr.msrb.gmra.mxu1 %v170_v41 }
 0x12f   :  { %v400_v43 = vpop.f32.mrf.mxu0 }
 0x130   :  { %v414_v45 = vpop.f32.mrf.mxu1 }
 0x131   :  { %v415_v46 = vadd.f32 %v414_v45, %v400_v43 }
 0x133   :  { %v420_v47 = vadd.f32 %v415_v46, %v29_v44 }
 0x135   :  { %435 = vst [vmem:[#allocation3 + $0x8] sm:$0xff] %v420_v47  ;;  %v372_v48 = vpop.f32.mrf.mxu2 }
 0x136   :  { %v386_v50 = vpop.f32.mrf.mxu3 }
 0x137   :  { %v387_v51 = vadd.f32 %v386_v50, %v372_v48  ;;  %v402_v52 = vpop.f32.mrf.mxu0 }
 0x138   :  { %v416_v53 = vpop.f32.mrf.mxu1 }
 0x139   :  { %v419_v54 = vadd.f32 %v387_v51, %v28_v49  ;;  %v417_v55 = vadd.f32 %v416_v53, %v402_v52 }
 0x13b   :  { %434 = vst [vmem:[#allocation3] sm:$0xff] %v419_v54  ;;  %v422_v56 = vadd.f32 %v417_v55, %v29_v44 }
 0x13d   :  { %437 = vst [vmem:[#allocation3 + $0x18] sm:$0xff] %v422_v56  ;;  %v374_v57 = vpop.f32.mrf.mxu2 }
 0x13e   :  { %v388_v58 = vpop.f32.mrf.mxu3 }
 0x13f   :  { %v389_v59 = vadd.f32 %v388_v58, %v374_v57 }
 0x141   :  { %v421_v60 = vadd.f32 %v389_v59, %v28_v49 }
 0x143   :  { %436 = vst [vmem:[#allocation3 + $0x10] sm:$0xff] %v421_v60 }
 0x144   :  { %450 = dma.vmem_to_hbm [thread:$0]  %s443_s4, 512, %s445_s25, [#allocation4], %s701_s26, %s701_s26, %s702_s27  }
 0x145   :  { %698 = dma.done.wait [#allocation4], 512  }
 0x146   :  { %699 = vsyncadd [#allocation4], 4294966784 }
 0x147   :  { %455 = vsyncpa [#allocation4], 1 }

</bundles_post_ra>
